<compile_context>
chip_gen: v7x
topology: tpu7x:2x2x1
jax: 0.10.0
libtpu: 0.0.40
codegen_flags: <defaults>
</compile_context>

<pallas_src>
import functools

import jax
import jax.numpy as jnp
from jax.experimental import pallas as pl
from jax.experimental.pallas import tpu as pltpu


def _temporal_conv_kernel(x_ref, w0_ref, w1_ref, b_ref, o_ref, *, dia_v, cols_out):
    """One batch item: weight-stationary (2,1) dilated conv + bias + ReLU.

    x_ref  : (C_in,  T*V)       input slab (read once from HBM)
    w0_ref : (C_out, C_in)      temporal tap 0
    w1_ref : (C_out, C_in)      temporal tap 1
    b_ref  : (C_out, 1)         bias, f32
    o_ref  : (C_out, T_out*V)   lane-dense output slab
    """
    x0 = x_ref[:, :cols_out]                    # tap at t       (lane-aligned)
    x1 = x_ref[:, dia_v:dia_v + cols_out]       # tap at t + dia (on-chip lane shift, no extra HBM read)
    acc = jnp.dot(w0_ref[...], x0, preferred_element_type=jnp.float32)
    acc = acc + jnp.dot(w1_ref[...], x1, preferred_element_type=jnp.float32)
    acc = acc + b_ref[...]                      # (C_out, 1) broadcasts over lanes, f32 epilogue
    o_ref[...] = jnp.maximum(acc, 0.0).astype(o_ref.dtype)


def temporal_conv_layer(x, weight, bias, dia=1):
    """x: (N, C_in, T, V) NCHW; weight: (C_out, C_in, 2, 1); bias: (C_out,).

    Returns relu(conv2d(x)) with kernel (2,1), stride 1, dilation (dia,1), no padding:
    shape (N, C_out, T - dia, V).  Output dtype follows x.dtype.
    """
    N, C_in, T, V = x.shape
    C_out = weight.shape[0]
    T_out = T - dia
    TV = T * V
    cols_out = T_out * V
    dia_v = dia * V

    # Free, contiguous reshapes / tiny weight prep — no transposes, no data duplication.
    x_flat = x.reshape(N, C_in, TV)
    w0 = weight[:, :, 0, 0].astype(x.dtype)          # (C_out, C_in)
    w1 = weight[:, :, 1, 0].astype(x.dtype)          # (C_out, C_in)
    b_col = bias.reshape(C_out, 1).astype(jnp.float32)

    kernel = functools.partial(_temporal_conv_kernel, dia_v=dia_v, cols_out=cols_out)

    out = pl.pallas_call(
        kernel,
        out_shape=jax.ShapeDtypeStruct((N, C_out, cols_out), x.dtype),
        grid_spec=pltpu.PrefetchScalarGridSpec(
            num_scalar_prefetch=0,
            grid=(N,),
            in_specs=[
                # One whole per-batch slab per grid step; weights/bias stay resident.
                pl.BlockSpec((None, C_in, TV), lambda n: (n, 0, 0)),
                pl.BlockSpec((C_out, C_in), lambda n: (0, 0)),
                pl.BlockSpec((C_out, C_in), lambda n: (0, 0)),
                pl.BlockSpec((C_out, 1), lambda n: (0, 0)),
            ],
            out_specs=pl.BlockSpec((None, C_out, cols_out), lambda n: (n, 0, 0)),
        ),
        compiler_params=pltpu.CompilerParams(
            # Batch axis is independent -> megacore / 2-TC sharding on v7x when N >= 2.
            dimension_semantics=("parallel",),
        ),
    )(x_flat, w0, w1, b_col)

    return out.reshape(N, C_out, T_out, V)


def _reference(x, weight, bias, dia):
    """Pure-JAX f32 reference of relu(Conv2d((2,1), dilation=dia)(x))."""
    T = x.shape[2]
    x0 = x[:, :, :T - dia, :]
    x1 = x[:, :, dia:, :]
    y = (jnp.einsum('nctv,oc->notv', x0, weight[:, :, 0, 0])
         + jnp.einsum('nctv,oc->notv', x1, weight[:, :, 1, 0])
         + bias[None, :, None, None])
    return jnp.maximum(y, 0.0)


if __name__ == "__main__":
    # Small shapes consistent with the module: N=2, c_in=4, c_out=8, T=8, V=16, dia=1
    N, C_in, C_out, T, V, dia = 2, 4, 8, 8, 16, 1

    key = jax.random.PRNGKey(0)
    kx, kw, kb = jax.random.split(key, 3)
    x = jax.random.normal(kx, (N, C_in, T, V), dtype=jnp.float32)

    # Deterministic parameter init (Conv2d weight shape (C_out, C_in, 2, 1), bias (C_out,))
    fan_in = C_in * 2 * 1
    bound = 1.0 / jnp.sqrt(fan_in)
    weight = jax.random.uniform(kw, (C_out, C_in, 2, 1), jnp.float32, -bound, bound)
    bias = jax.random.uniform(kb, (C_out,), jnp.float32, -bound, bound)

    y_ref = _reference(x, weight, bias, dia)

    # f32 path (exact match vs. reference)
    y = temporal_conv_layer(x, weight, bias, dia=dia)
    y = jax.block_until_ready(y)
    assert y.shape == (N, C_out, T - dia, V), y.shape
    assert jnp.allclose(y, y_ref, atol=1e-5, rtol=1e-5), float(jnp.max(jnp.abs(y - y_ref)))

    # bf16 activation path (halves HBM traffic on the mem-bound kernel; f32 accumulation)
    y_bf16 = temporal_conv_layer(x.astype(jnp.bfloat16), weight, bias, dia=dia)
    y_bf16 = jax.block_until_ready(y_bf16)
    assert y_bf16.dtype == jnp.bfloat16
    assert jnp.allclose(y_bf16.astype(jnp.float32), y_ref, atol=8e-2, rtol=8e-2), \
        float(jnp.max(jnp.abs(y_bf16.astype(jnp.float32) - y_ref)))

    print("KERNEL_OK")
</pallas_src>

<mosaic_0001>
module attributes {stable_mosaic.version = 11 : i64} {
  func.func @_temporal_conv_kernel(%arg0: i32, %arg1: memref<1x4x128xf32, #tpu.memory_space<vmem>>, %arg2: memref<8x4xf32, #tpu.memory_space<vmem>>, %arg3: memref<8x4xf32, #tpu.memory_space<vmem>>, %arg4: memref<8x1xf32, #tpu.memory_space<vmem>>, %arg5: memref<1x8x112xf32, #tpu.memory_space<vmem>>) attributes {dimension_semantics = [#tpu.dimension_semantics<parallel>], iteration_bounds = array<i64: 2>, scalar_prefetch = 0 : i64, scratch_operands = 0 : i64, tpu.core_type = #tpu.core_type<tc>, window_params = [{transform_indices = @transform_0, window_bounds = array<i64: 1, 4, 128>}, {pipeline_mode = #tpu.pipeline_mode<synchronous>, transform_indices = @transform_1, window_bounds = array<i64: 8, 4>}, {pipeline_mode = #tpu.pipeline_mode<synchronous>, transform_indices = @transform_2, window_bounds = array<i64: 8, 4>}, {pipeline_mode = #tpu.pipeline_mode<synchronous>, transform_indices = @transform_3, window_bounds = array<i64: 8, 1>}, {transform_indices = @transform_4, window_bounds = array<i64: 1, 8, 112>}]} {
    %c0 = arith.constant 0 : index
    %c0_0 = arith.constant 0 : index
    %c0_1 = arith.constant 0 : index
    %0 = vector.load %arg1[%c0, %c0_0, %c0_1] : memref<1x4x128xf32, #tpu.memory_space<vmem>>, vector<1x4x112xf32>
    %1 = vector.shape_cast %0 : vector<1x4x112xf32> to vector<4x112xf32>
    %c0_2 = arith.constant 0 : index
    %c0_3 = arith.constant 0 : index
    %c16 = arith.constant 16 : index
    %2 = vector.load %arg1[%c0_2, %c0_3, %c16] : memref<1x4x128xf32, #tpu.memory_space<vmem>>, vector<1x4x112xf32>
    %3 = vector.shape_cast %2 : vector<1x4x112xf32> to vector<4x112xf32>
    %c0_4 = arith.constant 0 : index
    %c0_5 = arith.constant 0 : index
    %4 = vector.load %arg2[%c0_4, %c0_5] : memref<8x4xf32, #tpu.memory_space<vmem>>, vector<8x4xf32>
    %cst = arith.constant dense<0.000000e+00> : vector<8x112xf32>
    %5 = tpu.matmul %4, %1, %cst {dimension_numbers = #tpu.dot_dimension_numbers<[1], [0], [0], [1], [0, 0, 1, 1], [], []>} : vector<8x4xf32>, vector<4x112xf32>, vector<8x112xf32> -> vector<8x112xf32>
    %c0_6 = arith.constant 0 : index
    %c0_7 = arith.constant 0 : index
    %6 = vector.load %arg3[%c0_6, %c0_7] : memref<8x4xf32, #tpu.memory_space<vmem>>, vector<8x4xf32>
    %cst_8 = arith.constant dense<0.000000e+00> : vector<8x112xf32>
    %7 = tpu.matmul %6, %3, %cst_8 {dimension_numbers = #tpu.dot_dimension_numbers<[1], [0], [0], [1], [0, 0, 1, 1], [], []>} : vector<8x4xf32>, vector<4x112xf32>, vector<8x112xf32> -> vector<8x112xf32>
    %8 = arith.addf %5, %7 : vector<8x112xf32>
    %c0_9 = arith.constant 0 : index
    %c0_10 = arith.constant 0 : index
    %9 = vector.load %arg4[%c0_9, %c0_10] : memref<8x1xf32, #tpu.memory_space<vmem>>, vector<8x1xf32>
    %10 = vector.broadcast %9 : vector<8x1xf32> to vector<8x112xf32>
    %11 = arith.addf %8, %10 : vector<8x112xf32>
    %cst_11 = arith.constant 0.000000e+00 : f32
    %12 = vector.broadcast %cst_11 : f32 to vector<8x112xf32>
    %13 = arith.maximumf %11, %12 : vector<8x112xf32>
    %c0_12 = arith.constant 0 : index
    %c0_13 = arith.constant 0 : index
    %c0_14 = arith.constant 0 : index
    %14 = vector.load %arg5[%c0_12, %c0_13, %c0_14] : memref<1x8x112xf32, #tpu.memory_space<vmem>>, vector<1x8x112xf32>
    %15 = vector.shape_cast %14 : vector<1x8x112xf32> to vector<8x112xf32>
    %16 = vector.shape_cast %13 : vector<8x112xf32> to vector<1x8x112xf32>
    tpu.vector_store %arg5[%c0_12, %c0_13, %c0_14], %16 {strides = array<i32>} : memref<1x8x112xf32, #tpu.memory_space<vmem>>, vector<1x8x112xf32>,
    return
  }
  func.func @transform_0(%arg0: i32) -> (i32, i32, i32) {
    %c0_i32 = arith.constant 0 : i32
    %c0_i32_0 = arith.constant 0 : i32
    %c0_i32_1 = arith.constant 0 : i32
    return %arg0, %c0_i32, %c0_i32_0 : i32, i32, i32
  }
  func.func @transform_1(%arg0: i32) -> (i32, i32) {
    %c0_i32 = arith.constant 0 : i32
    %c0_i32_0 = arith.constant 0 : i32
    %c0_i32_1 = arith.constant 0 : i32
    return %c0_i32, %c0_i32_0 : i32, i32
  }
  func.func @transform_2(%arg0: i32) -> (i32, i32) {
    %c0_i32 = arith.constant 0 : i32
    %c0_i32_0 = arith.constant 0 : i32
    %c0_i32_1 = arith.constant 0 : i32
    return %c0_i32, %c0_i32_0 : i32, i32
  }
  func.func @transform_3(%arg0: i32) -> (i32, i32) {
    %c0_i32 = arith.constant 0 : i32
    %c0_i32_0 = arith.constant 0 : i32
    %c0_i32_1 = arith.constant 0 : i32
    return %c0_i32, %c0_i32_0 : i32, i32
  }
  func.func @transform_4(%arg0: i32) -> (i32, i32, i32) {
    %c0_i32 = arith.constant 0 : i32
    %c0_i32_0 = arith.constant 0 : i32
    %c0_i32_1 = arith.constant 0 : i32
    return %arg0, %c0_i32, %c0_i32_0 : i32, i32, i32
  }
}

</mosaic_0001>

<bundles_post_ra>
// kernel: tpu_custom_call.1
= control target key start
LH: loop header
LB: loop body
LE: loop exit
PB: predicated region body
PF: predicated region fallthrough
CT: control target
= control target key end

     0   :  { %9 = vsyncpa [#allocation3], 0  ;;  %s709_s0 = inlined_call_operand.vmem [shape: f32[2,4,128], index: 0, kind: input, shape index: {}]   ;;  %s710_s1 = inlined_call_operand.vmem [shape: f32[8,4], index: 1, kind: input, shape index: {}]   ;;  %s711_s2 = inlined_call_operand.vmem [shape: f32[8,4], index: 2, kind: input, shape index: {}]   ;;  %s712_s3 = inlined_call_operand.vmem [shape: f32[8,1], index: 3, kind: input, shape index: {}]   ;;  %s713_s4 = inlined_call_operand.hbm [shape: f32[2,8,112], index: 4, kind: output, shape index: {}]  }
   0x1   :  { %11 = vsyncpa [#allocation3 + $0x1], 0  ;;  %s600_s15 = smov 0   ;;  %s602_s16 = smov 0  }
   0x2   :  { %s604_s17 = smov 0   ;;  %s606_s18 = smov 0  }
   0x3 LB: > { %s621_s19 = sadd.s32 4294967295, %s568_s18   ;;  %s434_s20 = sadd.s32 4294967294, %s568_s18   ;;  %s568_s18 = sphi %s606_s18, %s719_s18   ;;  %s564_s17 = sphi %s604_s17, %s718_s17   ;;  %s560_s16 = sphi %s602_s16, %s717_s16   ;;  %s556_s15 = sphi %s600_s15, %s716_s15  }
   0x4   : > { %s625_s21 = sadd.s32 1, %s568_s18   ;;  %s113_s22 = sadd.s32 1, %s564_s17 }
   0x5   : > { %s110_s23 = ssub.s32 %s568_s18, %s625_s21  ;;  %p123_p0 = scmp.ne.s32.totalorder %s564_s17, %s560_s16 }
   0x6   : > { %p111_p1 = scmp.eq.s32.totalorder %s110_s23, 0  ;;  %p124_p2 = scmp.eq.s32.totalorder %s621_s19, 1 }
   0x7   : > { %p129_p3 = scmp.ne.s32.totalorder %s560_s16, %s556_s15  ;;  %p130_p4 = scmp.eq.s32.totalorder %s434_s20, 1 }
   0x8   : > { %s636_s24 = scalar_select %p111_p1, %s564_s17, %s113_s22  }
   0x9   : > { %p638_p5 = por %p124_p2, %p123_p0  ;;  %p642_p6 = por %p130_p4, %p129_p3 }
   0xa   : > { %p437_p7 = scmp.ge.s32.totalorder %s568_s18, 1  ;;  %p164_p8 = scmp.lt.s32.totalorder %s568_s18, 3 }
   0xc   : > { %p165_p9 = pnand %p437_p7, %p164_p8 }
   0xd   : > { %p189_p10 = scmp.lt.s32.totalorder (!%p165_p9), %s621_s19, 1  ;;  %v570_v0 = vmov (!%p165_p9), 0.0   ;;  %vm571_vm0 = vmmov (!%p165_p9), 0   ;;  %v572_v1 = vmov (!%p165_p9), 0   ;;  %vm203_vm1 = vcmask (!%p165_p9), 1043456   ;;  %v194_v2 = vld [vmem:[%s710_s1] sm:$0xff] (!%p165_p9) }
   0xe   : > { %168 = sbr.rel (%p165_p9) target bundleno = 374 (0x176), region = 36  ;;  %457 = vmatprep.subr.mxu1 (!%p165_p9), %v570_v0  ;;  %452 = vmatprep.subr.mxu0 (!%p165_p9), %v570_v0  ;;  %vm199_vm2 = vcmask (!%p165_p9), 31744   ;;  %s573_s8 = smov (!%p165_p9), 112   ;;  %v351_v4 = vld [vmem:[%s712_s3] sm:$0xff] (!%p165_p9)  ;;  %vm359_vm3 = vcmask (!%p165_p9), 916480  }
   0xf   : > { %459 = vmatprep.mubr.msk.f32.mxu1 (!%p165_p9), %vm571_vm0, %v570_v0  ;;  %454 = vmatprep.mubr.msk.f32.mxu0 (!%p165_p9), %vm571_vm0, %v570_v0  ;;  %v195_v5 = vld [vmem:[%s711_s2] sm:$0xff] (!%p165_p9)  ;;  %s186_s13 = sand.u32 (!%p165_p9), 1, %s560_s16   ;;  %s445_s20 = sshll.u32 (!%p165_p9), %s621_s19, 7 }
  0x10   : > { %505 = vset.pattern.permute.xlu0 (!%p165_p9), %v572_v1  ;;  %s438_s14 = sshll.u32 (!%p165_p9), %s186_s13, 3  ;;  %s667_s29 = scalar_lea.hbm (!%p165_p9), %s713_s4, %s445_s20 }
  0x11   : > { %s188_s22 = scalar_lea.vmem (!%p165_p9), [#allocation2], %s438_s14  ;;  %s362_s30 = scalar_lea.sflag (!%p165_p9), [#allocation3], %s186_s13 }
  0x12   : > { %s375_s23 = sshll.u32 (!%p165_p9), %s188_s22, 4  ;;  %s669_s23 = int_to_ptr.vmem [resolvable:$true] %s375_s23 }
  0x15   : > { %s190_s27 = scalar_select %p189_p10, %s621_s19, 1 }
  0x16   : > { %s574_s19 = smov [#allocation2]  }
  0x17   : > { %s439_s28 = sshll.u32 %s190_s27, 2  ;;  %s510_s6 = sshll.u32 %s574_s19, 4  ;;  %s511_s6 = int_to_ptr.vmem [resolvable:$false] %s510_s6 }
  0x18   : > { %s192_s5 = scalar_lea.vmem %s709_s0, %s439_s28  ;;  %s512_s7 = scalar_lea.vmem %s511_s6, 256 }
  0x19   : > { %v193_v3 = vld [vmem:[%s192_s5] sm:$0xf]  ;;  %s506_s5 = scalar_lea.vmem %s669_s23, 128  ;;  %p513_p0 = scmp.lt.s32.totalorder %s669_s23, %s511_s6 }
  0x1a   : > { %197 = vrot.lane.b32.xlu0 %v193_v3, %s573_s8  ;;  %458 = vmatpush3.msk.msra.mxu1 %vm203_vm1, %v193_v3  ;;  %p507_p11 = scmp.ne.s32.totalorder %s669_s23, %s506_s5  ;;  %p514_p1 = scmp.lt.s32.totalorder %s512_s7, %s506_s5 }
  0x1b   : > { %460 = vmatmul.mubr.msk.f32.vlgmr.msra.gmra.mrb[0].mxu1 %vm199_vm2, %v194_v2 }
  0x1c   : > { %p508_p12 = pnand %p507_p11, %p638_p5  ;;  %p515_p2 = por %p514_p1, %p513_p0 }
  0x1e   : > { %354 = vperm.xlu0 %505, %v351_v4   ;;  %p509_p13 = pneg %p508_p12 }
  0x20   : > { %p516_p3 = pnand %p515_p2, %p509_p13 }
  0x8c   : > { %v198_v6 = vpop.permute.xlu0 %197 }
  0x8d   : > { %453 = vmatpush3.msk.msra.mxu0 %vm203_vm1, %v198_v6 }
  0x8e   : > { %455 = vmatmul.mubr.msk.f32.vlgmr.msra.gmra.mrb[0].mxu0 %vm199_vm2, %v195_v5 }
  0x9d   : > { %v355_v10 = vpop.permute.xlu0 %354 }
  0xee   : > { %v347_v7 = vpop.f32.mrb[0].mxu1 }
  0xef   : > { %v461_v8 = vpop.f32.mrb[1].mxu1 }
 0x161   : > { %v272_v9 = vpop.f32.mrb[0].mxu0 }
 0x162   : > { %v348_v11 = vadd.f32 %v347_v7, %v272_v9  ;;  %v456_v12 = vpop.f32.mrb[1].mxu0 }
 0x164   : > { %v357_v13 = vadd.f32 %v355_v10, %v348_v11 }
 0x166   : > { %v358_v14 = vmax.f32 %v357_v13, 0.0 }
 0x168   : > { %360 = vst.msk [vmem:[%s188_s22] sm:$0xff] %vm359_vm3, %v358_v14 }
 0x169   : > { %519 = shalt.err (!%p516_p3)
}
 0x16a   : > { %s520_s8 = scalar_lea.hbm %s667_s29, 128  ;;  %s524_s11 = scalar_lea.hbm %s713_s4, 256 }
 0x16b   : > { %p521_p4 = scmp.ne.s32.totalorder %s667_s29, %s520_s8  ;;  %p525_p9 = scmp.lt.u32.totalorder %s667_s29, %s713_s4 }
 0x16c   : > { %p526_p10 = scmp.lt.u32.totalorder %s524_s11, %s520_s8  ;;  %p528_p12 = scmp.lt.u32.totalorder %s520_s8, %s667_s29 }
 0x16d   : > { %p522_p7 = pnand %p521_p4, %p638_p5 }
 0x16e   : > { %p527_p11 = por %p526_p10, %p525_p9 }
 0x16f   : > { %p523_p8 = pneg %p522_p7 }
 0x170   : > { %p529_p13 = por %p528_p12, %p527_p11 }
 0x172   : > { %p530_p0 = pnand %p529_p13, %p523_p8 }
 0x174   : > { %533 = shalt.err (!%p530_p0)
}
 0x175   : > { %462 = dma.vmem_to_hbm [thread:$0]  (%p638_p5), %s669_s23, 128, %s667_s29, %s362_s30  }
 0x176 PF: > { %p468_p1 = scmp.ge.s32.totalorder %s568_s18, 2  ;;  %s387_s14 = sand.u32 1, %s556_s15  }
 0x177   : > { %s388_s20 = scalar_lea.sflag [#allocation3], %s387_s14 }
 0x178   : > { %p465_p2 = pnand %p468_p1, %p642_p6 }
 0x17a   : > { %551 = dma.done.wait (!%p465_p2), %s388_s20, 128  }
 0x17b   : > { %553 = vsyncadd (!%p465_p2), %s388_s20, 4294967168  ;;  %p14_p3 = scmp.ge.s32.totalorder %s625_s21, 4   ;;  %s716_s15 = smov %s560_s16 }
 0x17c   : > { %s717_s16 = smov %s564_s17  ;;  %s718_s17 = smov %s636_s24 }
 0x17d   : > { %s719_s18 = smov %s625_s21  ;;  %16 = sbr.rel (!%p14_p3) target bundleno = 3 (0x3), region = 71 }
 0x184   :  { %393 = vsyncpa [#allocation3], 1 }
 0x185   :  { %395 = vsyncpa [#allocation3 + $0x1], 1 }

</bundles_post_ra>
